<compile_context>
chip_gen: v7x
topology: tpu7x:2x2x1
jax: 0.10.0
libtpu: 0.0.40
codegen_flags: <defaults>
</compile_context>

<pallas_src>
import math
from functools import partial

import jax
import jax.numpy as jnp
from jax.experimental import pallas as pl
from jax.experimental.pallas import tpu as pltpu

LANE = 128      # output padded to a multiple of the lane width for dense stores
MAX_TB = 512    # batch-tile cap (VMEM-friendly on v7x's 64 MiB / 32 MiB scoped)


def _round_up(n, m):
    return ((n + m - 1) // m) * m


def dqn_kernel(x_ref, w1_ref, b1_ref, w2_ref, b2_ref, w3_ref, b3_ref, o_ref):
    """Fused 3-layer noisy MLP: relu(x@W1+b1) -> relu(.@W2+b2) -> .@W3+b3."""
    h1 = jnp.dot(x_ref[...], w1_ref[...], preferred_element_type=jnp.float32)
    h1 = jnp.maximum(h1 + b1_ref[...], 0.0)
    h2 = jnp.dot(h1, w2_ref[...], preferred_element_type=jnp.float32)
    h2 = jnp.maximum(h2 + b2_ref[...], 0.0)
    o_ref[...] = (
        jnp.dot(h2, w3_ref[...], preferred_element_type=jnp.float32) + b3_ref[...]
    )


def dqn_forward(x, w1, b1, w2, b2, w3, b3, out_dim):
    """x: (B, D) f32. Weights are (in, out); biases (1, out). w3/b3's out dim is
    already zero-padded to a multiple of 128; result is sliced back to out_dim."""
    B, D = x.shape
    H1 = w1.shape[1]
    H2 = w2.shape[1]
    OP = w3.shape[1]  # padded (lane-dense) output width

    # Batch tile: multiple of 8 sublanes, capped; pad batch so the grid is exact.
    TB = min(MAX_TB, _round_up(max(B, 1), 8))
    Bp = _round_up(B, TB)
    if Bp != B:
        x = jnp.pad(x, ((0, Bp - B), (0, 0)))

    out = pl.pallas_call(
        dqn_kernel,
        out_shape=jax.ShapeDtypeStruct((Bp, OP), jnp.float32),
        grid=(Bp // TB,),
        in_specs=[
            pl.BlockSpec((TB, D), lambda i: (i, 0)),    # x: tiled over batch
            pl.BlockSpec((D, H1), lambda i: (0, 0)),    # weights/biases: resident
            pl.BlockSpec((1, H1), lambda i: (0, 0)),
            pl.BlockSpec((H1, H2), lambda i: (0, 0)),
            pl.BlockSpec((1, H2), lambda i: (0, 0)),
            pl.BlockSpec((H2, OP), lambda i: (0, 0)),
            pl.BlockSpec((1, OP), lambda i: (0, 0)),
        ],
        out_specs=pl.BlockSpec((TB, OP), lambda i: (i, 0)),
        compiler_params=pltpu.CompilerParams(
            dimension_semantics=("parallel",)   # 2 TCs on v7x; no-op on v5e/v6e
        ),
    )(x, w1, b1, w2, b2, w3, b3)
    return out[:B, :out_dim]


def init_noisy_linear(key, in_features, out_features, sigma_init=0.017):
    """NoisyLinear.reset_parameters(), with weight stored pre-transposed (in, out)."""
    kw, kb = jax.random.split(key)
    std = math.sqrt(3.0 / in_features)
    weight = jax.random.uniform(
        kw, (in_features, out_features), jnp.float32, -std, std
    )
    bias = jax.random.uniform(kb, (out_features,), jnp.float32, -std, std)
    return {
        "weight": weight,
        "bias": bias,
        "sigma_weight": jnp.full((in_features, out_features), sigma_init, jnp.float32),
        "sigma_bias": jnp.full((out_features,), sigma_init, jnp.float32),
    }


def noisy_effective_params(key, layer, pad_out_to=None):
    """Per-forward NoisyLinear glue: eps ~ N(0,1), W_eff = W + sigma_w*eps_w,
    b_eff = b + sigma_b*eps_b. Weights already live in (in, out) layout, so no
    transpose. Optionally zero-pads the out dim (lane-dense final layer)."""
    kw, kb = jax.random.split(key)
    eps_w = jax.random.normal(kw, layer["weight"].shape, jnp.float32)
    eps_b = jax.random.normal(kb, layer["bias"].shape, jnp.float32)
    w = layer["weight"] + layer["sigma_weight"] * eps_w        # (in, out)
    b = layer["bias"] + layer["sigma_bias"] * eps_b            # (out,)
    if pad_out_to is not None and pad_out_to > w.shape[1]:
        pad = pad_out_to - w.shape[1]
        w = jnp.pad(w, ((0, 0), (0, pad)))
        b = jnp.pad(b, ((0, pad),))
    return w, b[None, :]                                       # bias as (1, out) row


@partial(jax.jit, static_argnames=("out_dim",))
def dqn_apply(key, x, layers, out_dim):
    """Full DQN forward (noise resample + fused MLP kernel) in one compiled region."""
    k1, k2, k3 = jax.random.split(key, 3)
    l1, l2, l3 = layers
    w1, b1 = noisy_effective_params(k1, l1)
    w2, b2 = noisy_effective_params(k2, l2)
    w3, b3 = noisy_effective_params(k3, l3, pad_out_to=_round_up(out_dim, LANE))
    return dqn_forward(x, w1, b1, w2, b2, w3, b3, out_dim)


if __name__ == "__main__":
    # CartPole-ish: state dim 4, 2 actions, hidden 64, small batch.
    batch, input_dim, hidden, output_dim = 8, 4, 64, 2

    root = jax.random.PRNGKey(0)
    k_x, k1, k2, k3, k_noise = jax.random.split(root, 5)

    x = jax.random.normal(k_x, (batch, input_dim), jnp.float32)

    layers = (
        init_noisy_linear(k1, input_dim, hidden),
        init_noisy_linear(k2, hidden, 64),
        init_noisy_linear(k3, 64, output_dim),
    )

    out = dqn_apply(k_noise, x, layers, output_dim)
    jax.block_until_ready(out)

    # Plain-JAX reference with the exact same deterministically-sampled noise
    # (same key-split structure as dqn_apply).
    kn1, kn2, kn3 = jax.random.split(k_noise, 3)
    w1, b1 = noisy_effective_params(kn1, layers[0])
    w2, b2 = noisy_effective_params(kn2, layers[1])
    w3, b3 = noisy_effective_params(kn3, layers[2])
    h1 = jnp.maximum(x @ w1 + b1, 0.0)
    h2 = jnp.maximum(h1 @ w2 + b2, 0.0)
    ref = h2 @ w3 + b3

    assert out.shape == (batch, output_dim)
    assert jnp.allclose(out, ref, atol=1e-5, rtol=1e-5), float(
        jnp.max(jnp.abs(out - ref))
    )

    print("KERNEL_OK")
</pallas_src>

<mosaic_0001>
module attributes {stable_mosaic.version = 11 : i64} {
  func.func @dqn_kernel(%arg0: i32, %arg1: memref<8x4xf32, #tpu.memory_space<vmem>>, %arg2: memref<4x64xf32, #tpu.memory_space<vmem>>, %arg3: memref<1x64xf32, #tpu.memory_space<vmem>>, %arg4: memref<64x64xf32, #tpu.memory_space<vmem>>, %arg5: memref<1x64xf32, #tpu.memory_space<vmem>>, %arg6: memref<64x128xf32, #tpu.memory_space<vmem>>, %arg7: memref<1x128xf32, #tpu.memory_space<vmem>>, %arg8: memref<8x128xf32, #tpu.memory_space<vmem>>) attributes {dimension_semantics = [#tpu.dimension_semantics<parallel>], iteration_bounds = array<i64: 1>, scalar_prefetch = 0 : i64, scratch_operands = 0 : i64, tpu.core_type = #tpu.core_type<tc>, window_params = [{transform_indices = @transform_0, window_bounds = array<i64: 8, 4>}, {pipeline_mode = #tpu.pipeline_mode<synchronous>, transform_indices = @transform_1, window_bounds = array<i64: 4, 64>}, {pipeline_mode = #tpu.pipeline_mode<synchronous>, transform_indices = @transform_2, window_bounds = array<i64: 1, 64>}, {pipeline_mode = #tpu.pipeline_mode<synchronous>, transform_indices = @transform_3, window_bounds = array<i64: 64, 64>}, {pipeline_mode = #tpu.pipeline_mode<synchronous>, transform_indices = @transform_4, window_bounds = array<i64: 1, 64>}, {pipeline_mode = #tpu.pipeline_mode<synchronous>, transform_indices = @transform_5, window_bounds = array<i64: 64, 128>}, {pipeline_mode = #tpu.pipeline_mode<synchronous>, transform_indices = @transform_6, window_bounds = array<i64: 1, 128>}, {transform_indices = @transform_7, window_bounds = array<i64: 8, 128>}]} {
    %c0 = arith.constant 0 : index
    %c0_0 = arith.constant 0 : index
    %0 = vector.load %arg1[%c0, %c0_0] : memref<8x4xf32, #tpu.memory_space<vmem>>, vector<8x4xf32>
    %c0_1 = arith.constant 0 : index
    %c0_2 = arith.constant 0 : index
    %1 = vector.load %arg2[%c0_1, %c0_2] : memref<4x64xf32, #tpu.memory_space<vmem>>, vector<4x64xf32>
    %cst = arith.constant dense<0.000000e+00> : vector<8x64xf32>
    %2 = tpu.matmul %0, %1, %cst {dimension_numbers = #tpu.dot_dimension_numbers<[1], [0], [0], [1], [0, 0, 1, 1], [], []>} : vector<8x4xf32>, vector<4x64xf32>, vector<8x64xf32> -> vector<8x64xf32>
    %c0_3 = arith.constant 0 : index
    %c0_4 = arith.constant 0 : index
    %3 = vector.load %arg3[%c0_3, %c0_4] : memref<1x64xf32, #tpu.memory_space<vmem>>, vector<1x64xf32>
    %4 = vector.broadcast %3 : vector<1x64xf32> to vector<8x64xf32>
    %5 = arith.addf %2, %4 : vector<8x64xf32>
    %cst_5 = arith.constant 0.000000e+00 : f32
    %6 = vector.broadcast %cst_5 : f32 to vector<8x64xf32>
    %7 = arith.maximumf %5, %6 : vector<8x64xf32>
    %c0_6 = arith.constant 0 : index
    %c0_7 = arith.constant 0 : index
    %8 = vector.load %arg4[%c0_6, %c0_7] : memref<64x64xf32, #tpu.memory_space<vmem>>, vector<64x64xf32>
    %cst_8 = arith.constant dense<0.000000e+00> : vector<8x64xf32>
    %9 = tpu.matmul %7, %8, %cst_8 {dimension_numbers = #tpu.dot_dimension_numbers<[1], [0], [0], [1], [0, 0, 1, 1], [], []>} : vector<8x64xf32>, vector<64x64xf32>, vector<8x64xf32> -> vector<8x64xf32>
    %c0_9 = arith.constant 0 : index
    %c0_10 = arith.constant 0 : index
    %10 = vector.load %arg5[%c0_9, %c0_10] : memref<1x64xf32, #tpu.memory_space<vmem>>, vector<1x64xf32>
    %11 = vector.broadcast %10 : vector<1x64xf32> to vector<8x64xf32>
    %12 = arith.addf %9, %11 : vector<8x64xf32>
    %cst_11 = arith.constant 0.000000e+00 : f32
    %13 = vector.broadcast %cst_11 : f32 to vector<8x64xf32>
    %14 = arith.maximumf %12, %13 : vector<8x64xf32>
    %c0_12 = arith.constant 0 : index
    %c0_13 = arith.constant 0 : index
    %15 = vector.load %arg6[%c0_12, %c0_13] : memref<64x128xf32, #tpu.memory_space<vmem>>, vector<64x128xf32>
    %cst_14 = arith.constant dense<0.000000e+00> : vector<8x128xf32>
    %16 = tpu.matmul %14, %15, %cst_14 {dimension_numbers = #tpu.dot_dimension_numbers<[1], [0], [0], [1], [0, 0, 1, 1], [], []>} : vector<8x64xf32>, vector<64x128xf32>, vector<8x128xf32> -> vector<8x128xf32>
    %c0_15 = arith.constant 0 : index
    %c0_16 = arith.constant 0 : index
    %17 = vector.load %arg7[%c0_15, %c0_16] : memref<1x128xf32, #tpu.memory_space<vmem>>, vector<1x128xf32>
    %18 = vector.broadcast %17 : vector<1x128xf32> to vector<8x128xf32>
    %19 = arith.addf %16, %18 : vector<8x128xf32>
    %c0_17 = arith.constant 0 : index
    %c0_18 = arith.constant 0 : index
    %20 = vector.load %arg8[%c0_17, %c0_18] : memref<8x128xf32, #tpu.memory_space<vmem>>, vector<8x128xf32>
    tpu.vector_store %arg8[%c0_17, %c0_18], %19 {strides = array<i32>} : memref<8x128xf32, #tpu.memory_space<vmem>>, vector<8x128xf32>,
    return
  }
  func.func @transform_0(%arg0: i32) -> (i32, i32) {
    %c0_i32 = arith.constant 0 : i32
    %c0_i32_0 = arith.constant 0 : i32
    return %arg0, %c0_i32 : i32, i32
  }
  func.func @transform_1(%arg0: i32) -> (i32, i32) {
    %c0_i32 = arith.constant 0 : i32
    %c0_i32_0 = arith.constant 0 : i32
    %c0_i32_1 = arith.constant 0 : i32
    return %c0_i32, %c0_i32_0 : i32, i32
  }
  func.func @transform_2(%arg0: i32) -> (i32, i32) {
    %c0_i32 = arith.constant 0 : i32
    %c0_i32_0 = arith.constant 0 : i32
    %c0_i32_1 = arith.constant 0 : i32
    return %c0_i32, %c0_i32_0 : i32, i32
  }
  func.func @transform_3(%arg0: i32) -> (i32, i32) {
    %c0_i32 = arith.constant 0 : i32
    %c0_i32_0 = arith.constant 0 : i32
    %c0_i32_1 = arith.constant 0 : i32
    return %c0_i32, %c0_i32_0 : i32, i32
  }
  func.func @transform_4(%arg0: i32) -> (i32, i32) {
    %c0_i32 = arith.constant 0 : i32
    %c0_i32_0 = arith.constant 0 : i32
    %c0_i32_1 = arith.constant 0 : i32
    return %c0_i32, %c0_i32_0 : i32, i32
  }
  func.func @transform_5(%arg0: i32) -> (i32, i32) {
    %c0_i32 = arith.constant 0 : i32
    %c0_i32_0 = arith.constant 0 : i32
    %c0_i32_1 = arith.constant 0 : i32
    return %c0_i32, %c0_i32_0 : i32, i32
  }
  func.func @transform_6(%arg0: i32) -> (i32, i32) {
    %c0_i32 = arith.constant 0 : i32
    %c0_i32_0 = arith.constant 0 : i32
    %c0_i32_1 = arith.constant 0 : i32
    return %c0_i32, %c0_i32_0 : i32, i32
  }
  func.func @transform_7(%arg0: i32) -> (i32, i32) {
    %c0_i32 = arith.constant 0 : i32
    %c0_i32_0 = arith.constant 0 : i32
    return %arg0, %c0_i32 : i32, i32
  }
}

</mosaic_0001>

<bundles_post_ra>
// kernel: dqn_apply.3
= control target key start
LH: loop header
LB: loop body
LE: loop exit
PB: predicated region body
PF: predicated region fallthrough
CT: control target
= control target key end

     0   :  { %vm39_vm0 = vcmask 1043456   ;;  %vm35_vm1 = vcmask 31744   ;;  %v394_v0 = vmov 0.0   ;;  %vm395_vm2 = vmmov 0   ;;  %s503_s1 = inlined_call_operand.vmem [shape: f32[4,64], index: 1, kind: input, shape index: {}]   ;;  %s504_s0 = inlined_call_operand.vmem [shape: f32[8,4], index: 0, kind: input, shape index: {}]   ;;  %s505_s3 = inlined_call_operand.vmem [shape: f32[64,64], index: 3, kind: input, shape index: {}]   ;;  %s506_s5 = inlined_call_operand.vmem [shape: f32[64,128], index: 5, kind: input, shape index: {}]   ;;  %s507_s2 = inlined_call_operand.vmem [shape: f32[1,64], index: 2, kind: input, shape index: {}]   ;;  %s508_s4 = inlined_call_operand.vmem [shape: f32[1,64], index: 4, kind: input, shape index: {}]   ;;  %s509_s6 = inlined_call_operand.vmem [shape: f32[1,128], index: 6, kind: input, shape index: {}]   ;;  %s510_s7 = inlined_call_operand.vmem [shape: f32[8,128], index: 7, kind: output, shape index: {}]  }
   0x1   :  { %324 = vmatprep.subr.mxu0 %v394_v0  ;;  %v27_v1 = vld [vmem:[%s503_s1] sm:$0xf]  ;;  %326 = vmatprep.mubr.msk.f32.mxu0 %vm395_vm2, %v394_v0  ;;  %v396_v4 = vmov 0.0|0.0   ;;  %v115_v5 = vld [vmem:[%s505_s3 + $0x8] sm:$0xff]  ;;  %v116_v6 = vld [vmem:[%s505_s3 + $0x10] sm:$0xff]  ;;  %vm129_vm3 = vcmask 523264  }
   0x2   :  { %v26_v2 = vld [vmem:[%s504_s0] sm:$0xff]  ;;  %325 = vmatpush3.msk.msra.mxu0 %vm39_vm0, %v27_v1  ;;  %367 = vmatprep.subr.bf16.mxu1 %v396_v4  ;;  %v117_v7 = vld [vmem:[%s505_s3 + $0x18] sm:$0xff]  ;;  %v119_v11 = vld [vmem:[%s505_s3 + $0x28] sm:$0xff] }
   0x3   :  { %v114_v3 = vld [vmem:[%s505_s3] sm:$0xff]  ;;  %327 = vmatmul.mubr.msk.f32.vlgmr.msra.gmra.mrb[0].mxu0 %vm35_vm1, %v26_v2  ;;  %345 = vmatprep.mubr.msk.f32.mxu1 %vm395_vm2, %v394_v0  ;;  %v371_v9 = vpack.c.bf16 %v117_v7, %v116_v6  ;;  %v120_v13 = vld [vmem:[%s505_s3 + $0x30] sm:$0xff]  ;;  %v121_v14 = vld [vmem:[%s505_s3 + $0x38] sm:$0xff] }
   0x4   :  { %v368_v8 = vpack.c.bf16 %v115_v5, %v114_v3  ;;  %379 = vmatprep.subr.bf16.mxu0 %v396_v4  ;;  %364 = vmatprep.mubr.msk.f32.mxu0 %vm395_vm2, %v394_v0  ;;  %v118_v10 = vld [vmem:[%s505_s3 + $0x20] sm:$0xff]  ;;  %v377_v15 = vpack.c.bf16 %v121_v14, %v120_v13  ;;  %v205_v17 = vld [vmem:[%s506_s5 + $0x8] sm:$0xff]  ;;  %v206_v18 = vld [vmem:[%s506_s5 + $0x10] sm:$0xff] }
   0x5   :  { %v374_v12 = vpack.c.bf16 %v119_v11, %v118_v10  ;;  %v204_v16 = vld [vmem:[%s506_s5] sm:$0xff]  ;;  %v207_v20 = vld [vmem:[%s506_s5 + $0x18] sm:$0xff]  ;;  %v209_v23 = vld [vmem:[%s506_s5 + $0x28] sm:$0xff] }
   0x6   :  { %369 = vmatpush3.bf16.msra.mxu1 %v368_v8  ;;  %v380_v19 = vpack.c.bf16 %v205_v17, %v204_v16  ;;  %v383_v21 = vpack.c.bf16 %v207_v20, %v206_v18  ;;  %v208_v22 = vld [vmem:[%s506_s5 + $0x20] sm:$0xff]  ;;  %v210_v30 = vld [vmem:[%s506_s5 + $0x30] sm:$0xff]  ;;  %v211_v31 = vld [vmem:[%s506_s5 + $0x38] sm:$0xff] }
   0x7   :  { %370 = vmatprep.subr.bf16.mxu1 %v396_v4  ;;  %v386_v24 = vpack.c.bf16 %v209_v23, %v208_v22  ;;  %v297_v25 = vld [vmem:[%s507_s2] ss:$0 sm:$0xff]  ;;  %v389_v32 = vpack.c.bf16 %v211_v31, %v210_v30 }
   0x8   :  { %381 = vmatpush3.bf16.msra.mxu0 %v380_v19  ;;  %v300_v33 = vld [vmem:[%s508_s4] ss:$0 sm:$0xff] }
   0x9   :  { %382 = vmatprep.subr.bf16.mxu0 %v396_v4  ;;  %v302_v38 = vld [vmem:[%s509_s6] ss:$0 sm:$0xff] }
   0xa   :  { %372 = vmatpush3.bf16.msra.mxu1 %v371_v9 }
   0xb   :  { %373 = vmatprep.subr.bf16.mxu1 %v396_v4 }
   0xc   :  { %384 = vmatpush3.bf16.msra.mxu0 %v383_v21 }
   0xd   :  { %385 = vmatprep.subr.bf16.mxu0 %v396_v4 }
   0xe   :  { %375 = vmatpush3.bf16.msra.mxu1 %v374_v12 }
   0xf   :  { %376 = vmatprep.subr.bf16.mxu1 %v396_v4 }
  0x10   :  { %387 = vmatpush3.bf16.msra.mxu0 %v386_v24 }
  0x11   :  { %388 = vmatprep.subr.bf16.mxu0 %v396_v4 }
  0x12   :  { %378 = vmatpush3.bf16.msra.mxu1 %v377_v15 }
  0x14   :  { %390 = vmatpush3.bf16.msra.mxu0 %v389_v32 }
  0xd6   :  { %v109_v26 = vpop.f32.mrb[0].mxu0 }
  0xd7   :  { %v110_v27 = vadd.f32 %v297_v25, %v109_v26  ;;  %v328_v28 = vpop.f32.mrb[1].mxu0 }
  0xd9   :  { %v113_v29 = vmax.f32 %v110_v27, 0.0 }
  0xdb   :  { %346 = vmatmul.mubr.msk.f32.vlgmr.msra.gmra.mrb[0].mxu1 %vm129_vm3, %v113_v29 }
 0x1ae   :  { %v199_v34 = vpop.f32.mrb[0].mxu1 }
 0x1af   :  { %v200_v35 = vadd.f32 %v300_v33, %v199_v34  ;;  %v347_v36 = vpop.f32.mrb[1].mxu1 }
 0x1b1   :  { %v203_v37 = vmax.f32 %v200_v35, 0.0 }
 0x1b3   :  { %365 = vmatmul.mubr.msk.f32.vlgmr.msra.gmra.mrb[2].mxu0 %vm129_vm3, %v203_v37 }
 0x286   :  { %v288_v39 = vpop.f32.mrb[2].mxu0 }
 0x287   :  { %v289_v40 = vadd.f32 %v302_v38, %v288_v39  ;;  %v366_v41 = vpop.f32.mrb[3].mxu0 }
 0x289   :  { %292 = vst [vmem:[%s510_s7] sm:$0xff] %v289_v40 }

</bundles_post_ra>
